<compile_context>
chip_gen: v5e
topology: v5e:2x2
jax: 0.10.0
libtpu: 0.0.40
codegen_flags: <defaults>
</compile_context>

<pallas_src>
import jax
import jax.numpy as jnp
from jax.experimental import pallas as pl
from jax.experimental.pallas import tpu as pltpu


def _round_up(x, m):
    return ((x + m - 1) // m) * m


def actor_kernel(ma_ref, s_ref, w1_ref, b1_ref, w2_ref, b2_ref, w3_ref, b3_ref,
                 o_ref):
    """One batch tile of the Actor MLP (3 matmuls + relu/relu/tanh)."""
    max_action = ma_ref[0]  # scalar read from SMEM

    # l1 + ReLU (bf16 operands, f32 accumulate, f32 epilogue)
    s = s_ref[...].astype(jnp.bfloat16)
    h1 = jnp.dot(s, w1_ref[...], preferred_element_type=jnp.float32) + b1_ref[...]
    h1 = jnp.maximum(h1, 0.0)

    # l2 + ReLU
    h2 = jnp.dot(h1.astype(jnp.bfloat16), w2_ref[...],
                 preferred_element_type=jnp.float32) + b2_ref[...]
    h2 = jnp.maximum(h2, 0.0)

    # l3 + tanh, scaled by max_action
    a = jnp.dot(h2.astype(jnp.bfloat16), w3_ref[...],
                preferred_element_type=jnp.float32) + b3_ref[...]
    o_ref[...] = (max_action * jnp.tanh(a)).astype(o_ref.dtype)


def actor_forward(s, params, max_action):
    """params = (w1, b1, w2, b2, w3, b3); w_i: [in, out] f32, b_i: [1, out] f32."""
    w1, b1, w2, b2, w3, b3 = params
    batch, state_dim = s.shape
    hidden = w1.shape[1]
    action_dim = w3.shape[1]

    # Lane-dense / sublane-friendly padded dims.
    S = _round_up(state_dim, 128)
    H = _round_up(hidden, 128)
    A = _round_up(action_dim, 128)

    # Adaptive batch tile: single tile for small batches (no wasted padded
    # rows / grid steps), 512-row tiles for large batches.
    if batch <= 512:
        TB = _round_up(batch, 8)
    else:
        TB = 512
    B = _round_up(batch, TB)                # padded batch covered by the grid
    grid = (B // TB,)

    def pad2(x, rows, cols, dtype):
        x = x.astype(dtype)
        return jnp.pad(x, ((0, rows - x.shape[0]), (0, cols - x.shape[1])))

    # Zero padding keeps the math exact for the real rows/columns.
    s_p = pad2(s, B, S, jnp.bfloat16)       # bf16 activation feed -> half DMA bytes
    w1_p = pad2(w1, S, H, jnp.bfloat16)
    w2_p = pad2(w2, H, H, jnp.bfloat16)
    w3_p = pad2(w3, H, A, jnp.bfloat16)
    b1_p = pad2(b1, 1, H, jnp.float32)
    b2_p = pad2(b2, 1, H, jnp.float32)
    b3_p = pad2(b3, 1, A, jnp.float32)
    ma = jnp.asarray([max_action], dtype=jnp.float32)

    const = lambda i: (0, 0)  # weights/biases: grid-resident, single DMA
    in_specs = [
        pl.BlockSpec(memory_space=pltpu.MemorySpace.SMEM),  # max_action scalar
        pl.BlockSpec((TB, S), lambda i: (i, 0)),            # s tile (pipelined)
        pl.BlockSpec((S, H), const),                        # w1
        pl.BlockSpec((1, H), const),                        # b1
        pl.BlockSpec((H, H), const),                        # w2
        pl.BlockSpec((1, H), const),                        # b2
        pl.BlockSpec((H, A), const),                        # w3
        pl.BlockSpec((1, A), const),                        # b3
    ]
    out_spec = pl.BlockSpec((TB, A), lambda i: (i, 0))

    cost = pl.CostEstimate(
        flops=2 * B * (S * H + H * H + H * A),
        transcendentals=B * A,
        bytes_accessed=(s_p.size * 2 + B * A * 4
                        + (w1_p.size + w2_p.size + w3_p.size) * 2
                        + (b1_p.size + b2_p.size + b3_p.size) * 4),
    )

    out = pl.pallas_call(
        actor_kernel,
        out_shape=jax.ShapeDtypeStruct((B, A), jnp.float32),
        grid=grid,
        in_specs=in_specs,
        out_specs=out_spec,
        compiler_params=pltpu.CompilerParams(
            dimension_semantics=("parallel",),  # megacore sharding on v7x
        ),
        cost_estimate=cost,
    )(ma, s_p, w1_p, b1_p, w2_p, b2_p, w3_p, b3_p)

    # Drop batch / feature padding.
    return out[:batch, :action_dim]


def init_actor_params(key, state_dim, action_dim, hidden_width, init_w=0.003):
    """Deterministic init mirroring the PyTorch module (fanin_init + uniform init_w).

    fanin_init uses fanin = weight.size()[0] = out_features (as in the original
    code). Biases use PyTorch's default Linear bias init:
    U(-1/sqrt(in_features), +1/sqrt(in_features)). Weights are stored [in, out].
    """
    k1, k2, k3, kb1, kb2, kb3 = jax.random.split(key, 6)

    def uniform(k, shape, bound):
        return jax.random.uniform(k, shape, jnp.float32, -bound, bound)

    v1 = 1.0 / jnp.sqrt(hidden_width)   # fanin = out_features of l1
    v2 = 1.0 / jnp.sqrt(hidden_width)   # fanin = out_features of l2

    w1 = uniform(k1, (state_dim, hidden_width), v1)
    w2 = uniform(k2, (hidden_width, hidden_width), v2)
    w3 = uniform(k3, (hidden_width, action_dim), init_w)

    b1 = uniform(kb1, (1, hidden_width), 1.0 / jnp.sqrt(state_dim))
    b2 = uniform(kb2, (1, hidden_width), 1.0 / jnp.sqrt(hidden_width))
    b3 = uniform(kb3, (1, action_dim), 1.0 / jnp.sqrt(hidden_width))

    return (w1, b1, w2, b2, w3, b3)


def actor_reference(s, params, max_action):
    """Pure-JAX f32 reference for correctness check."""
    w1, b1, w2, b2, w3, b3 = params
    h1 = jnp.maximum(s @ w1 + b1, 0.0)
    h2 = jnp.maximum(h1 @ w2 + b2, 0.0)
    return max_action * jnp.tanh(h2 @ w3 + b3)


if __name__ == "__main__":
    state_dim = 12
    action_dim = 4
    hidden_width = 32
    max_action = 2.0
    batch = 2

    key = jax.random.PRNGKey(0)
    k_params, k_s, k_s2 = jax.random.split(key, 3)

    params = init_actor_params(k_params, state_dim, action_dim, hidden_width)

    # Small batch (matches the module's typical single-state / tiny-batch use).
    s = jax.random.normal(k_s, (batch, state_dim), jnp.float32)
    out = jax.block_until_ready(actor_forward(s, params, max_action))
    ref = actor_reference(s, params, max_action)
    assert out.shape == (batch, action_dim)
    # Matmul operands are bf16 in the kernel -> loose tolerance vs f32 reference.
    assert jnp.allclose(out, ref, atol=2e-2, rtol=2e-2), "mismatch vs reference (batch=2)"

    # Larger batch to exercise the batch grid / padding / slicing path.
    batch2 = 300
    s2 = jax.random.normal(k_s2, (batch2, state_dim), jnp.float32)
    out2 = jax.block_until_ready(actor_forward(s2, params, max_action))
    ref2 = actor_reference(s2, params, max_action)
    assert out2.shape == (batch2, action_dim)
    assert jnp.allclose(out2, ref2, atol=2e-2, rtol=2e-2), "mismatch vs reference (batch=300)"

    # Batch large enough to use multiple 512-row grid steps.
    batch3 = 1100
    s3 = jax.random.normal(jax.random.PRNGKey(7), (batch3, state_dim), jnp.float32)
    out3 = jax.block_until_ready(actor_forward(s3, params, max_action))
    ref3 = actor_reference(s3, params, max_action)
    assert out3.shape == (batch3, action_dim)
    assert jnp.allclose(out3, ref3, atol=2e-2, rtol=2e-2), "mismatch vs reference (batch=1100)"

    print("KERNEL_OK")
</pallas_src>

<mosaic_0001>
module attributes {stable_mosaic.version = 11 : i64} {
  func.func @actor_kernel(%arg0: i32, %arg1: memref<1xf32, #tpu.memory_space<smem>>, %arg2: memref<8x128xbf16, #tpu.memory_space<vmem>>, %arg3: memref<128x128xbf16, #tpu.memory_space<vmem>>, %arg4: memref<1x128xf32, #tpu.memory_space<vmem>>, %arg5: memref<128x128xbf16, #tpu.memory_space<vmem>>, %arg6: memref<1x128xf32, #tpu.memory_space<vmem>>, %arg7: memref<128x128xbf16, #tpu.memory_space<vmem>>, %arg8: memref<1x128xf32, #tpu.memory_space<vmem>>, %arg9: memref<8x128xf32, #tpu.memory_space<vmem>>) attributes {dimension_semantics = [#tpu.dimension_semantics<parallel>], iteration_bounds = array<i64: 1>, scalar_prefetch = 0 : i64, scratch_operands = 0 : i64, tpu.core_type = #tpu.core_type<tc>, window_params = [{transform_indices = @transform_0, window_bounds = array<i64: 1>}, {transform_indices = @transform_1, window_bounds = array<i64: 8, 128>}, {pipeline_mode = #tpu.pipeline_mode<synchronous>, transform_indices = @transform_2, window_bounds = array<i64: 128, 128>}, {pipeline_mode = #tpu.pipeline_mode<synchronous>, transform_indices = @transform_3, window_bounds = array<i64: 1, 128>}, {pipeline_mode = #tpu.pipeline_mode<synchronous>, transform_indices = @transform_4, window_bounds = array<i64: 128, 128>}, {pipeline_mode = #tpu.pipeline_mode<synchronous>, transform_indices = @transform_5, window_bounds = array<i64: 1, 128>}, {pipeline_mode = #tpu.pipeline_mode<synchronous>, transform_indices = @transform_6, window_bounds = array<i64: 128, 128>}, {pipeline_mode = #tpu.pipeline_mode<synchronous>, transform_indices = @transform_7, window_bounds = array<i64: 1, 128>}, {transform_indices = @transform_8, window_bounds = array<i64: 8, 128>}]} {
    %c0 = arith.constant 0 : index
    %0 = memref.load %arg1[%c0] : memref<1xf32, #tpu.memory_space<smem>>
    %c0_0 = arith.constant 0 : index
    %c0_1 = arith.constant 0 : index
    %1 = vector.load %arg2[%c0_0, %c0_1] : memref<8x128xbf16, #tpu.memory_space<vmem>>, vector<8x128xbf16>
    %c0_2 = arith.constant 0 : index
    %c0_3 = arith.constant 0 : index
    %2 = vector.load %arg3[%c0_2, %c0_3] : memref<128x128xbf16, #tpu.memory_space<vmem>>, vector<128x128xbf16>
    %cst = arith.constant dense<0.000000e+00> : vector<8x128xf32>
    %3 = tpu.matmul %1, %2, %cst {dimension_numbers = #tpu.dot_dimension_numbers<[1], [0], [0], [1], [0, 0, 1, 1], [], []>} : vector<8x128xbf16>, vector<128x128xbf16>, vector<8x128xf32> -> vector<8x128xf32>
    %c0_4 = arith.constant 0 : index
    %c0_5 = arith.constant 0 : index
    %4 = vector.load %arg4[%c0_4, %c0_5] : memref<1x128xf32, #tpu.memory_space<vmem>>, vector<1x128xf32>
    %5 = vector.broadcast %4 : vector<1x128xf32> to vector<8x128xf32>
    %6 = arith.addf %3, %5 : vector<8x128xf32>
    %cst_6 = arith.constant 0.000000e+00 : f32
    %7 = vector.broadcast %cst_6 : f32 to vector<8x128xf32>
    %8 = arith.maximumf %6, %7 : vector<8x128xf32>
    %9 = arith.truncf %8 : vector<8x128xf32> to vector<8x128xbf16>
    %c0_7 = arith.constant 0 : index
    %c0_8 = arith.constant 0 : index
    %10 = vector.load %arg5[%c0_7, %c0_8] : memref<128x128xbf16, #tpu.memory_space<vmem>>, vector<128x128xbf16>
    %cst_9 = arith.constant dense<0.000000e+00> : vector<8x128xf32>
    %11 = tpu.matmul %9, %10, %cst_9 {dimension_numbers = #tpu.dot_dimension_numbers<[1], [0], [0], [1], [0, 0, 1, 1], [], []>} : vector<8x128xbf16>, vector<128x128xbf16>, vector<8x128xf32> -> vector<8x128xf32>
    %c0_10 = arith.constant 0 : index
    %c0_11 = arith.constant 0 : index
    %12 = vector.load %arg6[%c0_10, %c0_11] : memref<1x128xf32, #tpu.memory_space<vmem>>, vector<1x128xf32>
    %13 = vector.broadcast %12 : vector<1x128xf32> to vector<8x128xf32>
    %14 = arith.addf %11, %13 : vector<8x128xf32>
    %cst_12 = arith.constant 0.000000e+00 : f32
    %15 = vector.broadcast %cst_12 : f32 to vector<8x128xf32>
    %16 = arith.maximumf %14, %15 : vector<8x128xf32>
    %17 = arith.truncf %16 : vector<8x128xf32> to vector<8x128xbf16>
    %c0_13 = arith.constant 0 : index
    %c0_14 = arith.constant 0 : index
    %18 = vector.load %arg7[%c0_13, %c0_14] : memref<128x128xbf16, #tpu.memory_space<vmem>>, vector<128x128xbf16>
    %cst_15 = arith.constant dense<0.000000e+00> : vector<8x128xf32>
    %19 = tpu.matmul %17, %18, %cst_15 {dimension_numbers = #tpu.dot_dimension_numbers<[1], [0], [0], [1], [0, 0, 1, 1], [], []>} : vector<8x128xbf16>, vector<128x128xbf16>, vector<8x128xf32> -> vector<8x128xf32>
    %c0_16 = arith.constant 0 : index
    %c0_17 = arith.constant 0 : index
    %20 = vector.load %arg8[%c0_16, %c0_17] : memref<1x128xf32, #tpu.memory_space<vmem>>, vector<1x128xf32>
    %21 = vector.broadcast %20 : vector<1x128xf32> to vector<8x128xf32>
    %22 = arith.addf %19, %21 : vector<8x128xf32>
    %23 = math.tanh %22 : vector<8x128xf32>
    %24 = vector.broadcast %0 : f32 to vector<8x128xf32>
    %25 = arith.mulf %24, %23 : vector<8x128xf32>
    %c0_18 = arith.constant 0 : index
    %c0_19 = arith.constant 0 : index
    %26 = vector.load %arg9[%c0_18, %c0_19] : memref<8x128xf32, #tpu.memory_space<vmem>>, vector<8x128xf32>
    tpu.vector_store %arg9[%c0_18, %c0_19], %25 {strides = array<i32>} : memref<8x128xf32, #tpu.memory_space<vmem>>, vector<8x128xf32>,
    return
  }
  func.func @transform_0(%arg0: i32) -> i32 {
    %c0_i32 = arith.constant 0 : i32
    %c0_i32_0 = arith.constant 0 : i32
    return %c0_i32 : i32
  }
  func.func @transform_1(%arg0: i32) -> (i32, i32) {
    %c0_i32 = arith.constant 0 : i32
    %c0_i32_0 = arith.constant 0 : i32
    return %arg0, %c0_i32 : i32, i32
  }
  func.func @transform_2(%arg0: i32) -> (i32, i32) {
    %c0_i32 = arith.constant 0 : i32
    %c0_i32_0 = arith.constant 0 : i32
    %c0_i32_1 = arith.constant 0 : i32
    return %c0_i32, %c0_i32_0 : i32, i32
  }
  func.func @transform_3(%arg0: i32) -> (i32, i32) {
    %c0_i32 = arith.constant 0 : i32
    %c0_i32_0 = arith.constant 0 : i32
    %c0_i32_1 = arith.constant 0 : i32
    return %c0_i32, %c0_i32_0 : i32, i32
  }
  func.func @transform_4(%arg0: i32) -> (i32, i32) {
    %c0_i32 = arith.constant 0 : i32
    %c0_i32_0 = arith.constant 0 : i32
    %c0_i32_1 = arith.constant 0 : i32
    return %c0_i32, %c0_i32_0 : i32, i32
  }
  func.func @transform_5(%arg0: i32) -> (i32, i32) {
    %c0_i32 = arith.constant 0 : i32
    %c0_i32_0 = arith.constant 0 : i32
    %c0_i32_1 = arith.constant 0 : i32
    return %c0_i32, %c0_i32_0 : i32, i32
  }
  func.func @transform_6(%arg0: i32) -> (i32, i32) {
    %c0_i32 = arith.constant 0 : i32
    %c0_i32_0 = arith.constant 0 : i32
    %c0_i32_1 = arith.constant 0 : i32
    return %c0_i32, %c0_i32_0 : i32, i32
  }
  func.func @transform_7(%arg0: i32) -> (i32, i32) {
    %c0_i32 = arith.constant 0 : i32
    %c0_i32_0 = arith.constant 0 : i32
    %c0_i32_1 = arith.constant 0 : i32
    return %c0_i32, %c0_i32_0 : i32, i32
  }
  func.func @transform_8(%arg0: i32) -> (i32, i32) {
    %c0_i32 = arith.constant 0 : i32
    %c0_i32_0 = arith.constant 0 : i32
    return %arg0, %c0_i32 : i32, i32
  }
}

</mosaic_0001>

<bundles_post_ra>
// kernel: tpu_custom_call.1
= control target key start
LH: loop header
LB: loop body
LE: loop exit
PB: predicated region body
PF: predicated region fallthrough
CT: control target
= control target key end

     0   :  { %14 = vsyncpa [#allocation4], 0  ;;  %s703_s0 = inlined_call_operand.<no memory space> [shape: f32[1], index: 0, kind: input, shape index: {}]   ;;  %s704_s1 = inlined_call_operand.hbm [shape: bf16[8,128], index: 1, kind: input, shape index: {}]   ;;  %s705_s2 = inlined_call_operand.hbm [shape: bf16[128,128], index: 2, kind: input, shape index: {}]   ;;  %s706_s3 = inlined_call_operand.vmem [shape: f32[1,128], index: 3, kind: input, shape index: {}]   ;;  %s707_s4 = inlined_call_operand.hbm [shape: bf16[128,128], index: 4, kind: input, shape index: {}]   ;;  %s708_s5 = inlined_call_operand.vmem [shape: f32[1,128], index: 5, kind: input, shape index: {}]   ;;  %s709_s6 = inlined_call_operand.hbm [shape: bf16[128,128], index: 6, kind: input, shape index: {}]   ;;  %s710_s7 = inlined_call_operand.vmem [shape: f32[1,128], index: 7, kind: input, shape index: {}]   ;;  %s711_s8 = inlined_call_operand.hbm [shape: f32[8,128], index: 8, kind: output, shape index: {}]  }
   0x1   :  { %15 = vsyncpa [#allocation7], 0 }
   0x2   :  { %16 = vsyncpa [#allocation10], 0  ;;  %s35_s29 = sshll.u32 %s705_s2, 4  ;;  %s36_s29 = int_to_ptr.hbm [resolvable:$true] %s35_s29 }
   0x3   :  { %17 = vsyncpa [#allocation5], 0  ;;  %s624_s30 = smov [#allocation6]   ;;  %s25_s12 = sshll.u32 %s704_s1, 4  ;;  %s26_s12 = int_to_ptr.hbm [resolvable:$true] %s25_s12 }
   0x4   :  { %s37_s9 = sshll.u32 %s624_s30, 4  ;;  %s625_s13 = smov 64   ;;  %s38_s9 = int_to_ptr.vmem [resolvable:$true] %s37_s9 }
   0x5   :  { %s626_s14 = smov 4   ;;  %s627_s15 = smov [#allocation3]  }
   0x6   :  { %43 = dma.hbm_to_vmem [thread:$0]  %s36_s29, 1024, %s38_s9, [#allocation7], %s625_s13, %s625_s13, %s626_s14  }
   0x7   :  { %s27_s16 = sshll.u32 %s627_s15, 4  ;;  %s50_s19 = sshll.u32 %s707_s4, 4  ;;  %s28_s16 = int_to_ptr.vmem [resolvable:$true] %s27_s16  ;;  %s51_s19 = int_to_ptr.hbm [resolvable:$true] %s50_s19 }
   0x8   :  { %30 = dma.hbm_to_vmem [thread:$0]  %s26_s12, 64, %s28_s16, [#allocation4]  }
   0x9   :  { %s65_s21 = sshll.u32 %s709_s6, 4  ;;  %s628_s22 = smov [#allocation8]   ;;  %s66_s21 = int_to_ptr.hbm [resolvable:$true] %s65_s21 }
   0xa   :  { %s52_s23 = sshll.u32 %s628_s22, 4  ;;  %s629_s1 = smov [#allocation9]   ;;  %s53_s23 = int_to_ptr.vmem [resolvable:$true] %s52_s23 }
   0xb   :  { %58 = dma.hbm_to_vmem [thread:$0]  %s51_s19, 1024, %s53_s23, [#allocation7], %s625_s13, %s625_s13, %s626_s14  }
   0xc   :  { %s67_s24 = sshll.u32 %s629_s1, 4  ;;  %s68_s24 = int_to_ptr.vmem [resolvable:$true] %s67_s24 }
   0xd   :  { %73 = dma.hbm_to_vmem [thread:$0]  %s66_s21, 1024, %s68_s24, [#allocation10], %s625_s13, %s625_s13, %s626_s14  }
   0xe   :  { %616 = dma.done.wait [#allocation4], 64  }
   0xf   :  { %617 = vsyncadd [#allocation4], 4294967232 }
  0x10   :  { %618 = dma.done.wait [#allocation7], 2048  }
  0x11   :  { %619 = vsyncadd [#allocation7], 4294965248 }
  0x12   :  { %620 = dma.done.wait [#allocation10], 1024  }
  0x13   :  { %621 = vsyncadd [#allocation10], 4294966272  ;;  %v467_v0 = vld [vmem:[#allocation6 + $0x38] sm:$0xff]  ;;  %v466_v1 = vld [vmem:[#allocation6 + $0x30] sm:$0xff]  ;;  %v342_v40 = vstv %s703_s0  ;;  %s630_s30 = smov [#allocation11]   ;;  %s352_s11 = sshll.u32 %s711_s8, 4  ;;  %s353_s11 = int_to_ptr.hbm [resolvable:$true] %s352_s11 }
  0x14   :  { %162 = vmatpush.bf16.msra.mxu0 %v467_v0  ;;  %v475_v2 = vld [vmem:[#allocation8 + $0x38] sm:$0xff]  ;;  %v474_v3 = vld [vmem:[#allocation8 + $0x30] sm:$0xff]  ;;  %v465_v4 = vld [vmem:[#allocation6 + $0x28] sm:$0xff]  ;;  %s350_s9 = sshll.u32 %s630_s30, 4  ;;  %s351_s9 = int_to_ptr.vmem [resolvable:$true] %s350_s9 }
  0x15   :  { %245 = vmatpush.bf16.msra.mxu1 %v475_v2  ;;  %v473_v5 = vld [vmem:[#allocation8 + $0x28] sm:$0xff]  ;;  %v464_v6 = vld [vmem:[#allocation6 + $0x20] sm:$0xff]  ;;  %v463_v8 = vld [vmem:[#allocation6 + $0x18] sm:$0xff] }
  0x16   :  { %v472_v7 = vld [vmem:[#allocation8 + $0x20] sm:$0xff]  ;;  %v471_v9 = vld [vmem:[#allocation8 + $0x18] sm:$0xff]  ;;  %v462_v10 = vld [vmem:[#allocation6 + $0x10] sm:$0xff] }
  0x17   :  { %v470_v11 = vld [vmem:[#allocation8 + $0x10] sm:$0xff]  ;;  %v461_v12 = vld [vmem:[#allocation6 + $0x8] sm:$0xff]  ;;  %v460_v13 = vld [vmem:[#allocation6] sm:$0xff] }
  0x18   :  { %163 = vmatpush.bf16.msra.mxu0 %v466_v1  ;;  %v93_v14 = vld [vmem:[#allocation3] sm:$0xf]  ;;  %v469_v15 = vld [vmem:[#allocation8 + $0x8] sm:$0xff]  ;;  %v468_v16 = vld [vmem:[#allocation8] sm:$0xff] }
  0x19   :  { %246 = vmatpush.bf16.msra.mxu1 %v474_v3  ;;  %v483_v17 = vld [vmem:[#allocation9 + $0x38] sm:$0xff]  ;;  %v482_v18 = vld [vmem:[#allocation9 + $0x30] sm:$0xff]  ;;  %v481_v19 = vld [vmem:[#allocation9 + $0x28] sm:$0xff] }
  0x1a   :  { %328 = vmatpush.bf16.msra.mxu2 %v483_v17  ;;  %v480_v20 = vld [vmem:[#allocation9 + $0x20] sm:$0xff]  ;;  %v479_v21 = vld [vmem:[#allocation9 + $0x18] sm:$0xff]  ;;  %v478_v22 = vld [vmem:[#allocation9 + $0x10] sm:$0xff] }
  0x1b   :  { %v491_v23 = vld [vmem:[%s706_s3] ss:$0 sm:$0xff]  ;;  %v477_v29 = vld [vmem:[#allocation9 + $0x8] sm:$0xff]  ;;  %v476_v30 = vld [vmem:[#allocation9] sm:$0xff] }
  0x1c   :  { %164 = vmatpush.bf16.msra.mxu0 %v465_v4  ;;  %v492_v31 = vld [vmem:[%s708_s5] ss:$0 sm:$0xff] }
  0x1d   :  { %247 = vmatpush.bf16.msra.mxu1 %v473_v5  ;;  %v493_v37 = vld [vmem:[%s710_s7] ss:$0 sm:$0xff] }
  0x1e   :  { %329 = vmatpush.bf16.msra.mxu2 %v482_v18 }
  0x20   :  { %165 = vmatpush.bf16.msra.mxu0 %v464_v6 }
  0x21   :  { %248 = vmatpush.bf16.msra.mxu1 %v472_v7 }
  0x22   :  { %330 = vmatpush.bf16.msra.mxu2 %v481_v19 }
  0x24   :  { %166 = vmatpush.bf16.msra.mxu0 %v463_v8 }
  0x25   :  { %249 = vmatpush.bf16.msra.mxu1 %v471_v9 }
  0x26   :  { %331 = vmatpush.bf16.msra.mxu2 %v480_v20 }
  0x28   :  { %167 = vmatpush.bf16.msra.mxu0 %v462_v10 }
  0x29   :  { %250 = vmatpush.bf16.msra.mxu1 %v470_v11 }
  0x2a   :  { %332 = vmatpush.bf16.msra.mxu2 %v479_v21 }
  0x2c   :  { %168 = vmatpush.bf16.msra.mxu0 %v461_v12 }
  0x2d   :  { %251 = vmatpush.bf16.msra.mxu1 %v469_v15 }
  0x2e   :  { %333 = vmatpush.bf16.msra.mxu2 %v478_v22 }
  0x30   :  { %169 = vmatpush.bf16.msra.mxu0 %v460_v13 }
  0x31   :  { %252 = vmatpush.bf16.msra.mxu1 %v468_v16 }
  0x32   :  { %334 = vmatpush.bf16.msra.mxu2 %v477_v29 }
  0x33   :  { %170 = vmatmul.bf16.vlgmr.msra.gmra.mxu0 %v93_v14 }
  0x36   :  { %335 = vmatpush.bf16.msra.mxu2 %v476_v30 }
  0xb0   :  { %v171_v24 = vpop.f32.mrf.mxu0 }
  0xb1   :  { %v172_v25 = vadd.f32 %v491_v23, %v171_v24 }
  0xb3   :  { %v175_v26 = vmax.f32 %v172_v25, 0.0 }
  0xb5   :  { %v176_v27 = vpack.c.bf16 %v175_v26, %v175_v26 }
  0xb7   :  { %253 = vmatmul.bf16.vlgmr.msra.gmra.mxu1 %v176_v27 }
  0xb8   :  { %v173_v28 = vpop.f32.mrf.mxu0 }
 0x134   :  { %v254_v32 = vpop.f32.mrf.mxu1 }
 0x135   :  { %v255_v33 = vadd.f32 %v492_v31, %v254_v32 }
 0x137   :  { %v258_v34 = vmax.f32 %v255_v33, 0.0 }
 0x139   :  { %v259_v35 = vpack.c.bf16 %v258_v34, %v258_v34 }
 0x13b   :  { %336 = vmatmul.bf16.vlgmr.msra.gmra.mxu2 %v259_v35 }
 0x13c   :  { %v256_v36 = vpop.f32.mrf.mxu1 }
 0x1be   :  { %v337_v38 = vpop.f32.mrf.mxu2 }
 0x1bf   :  { %v338_v39 = vadd.f32 %v493_v37, %v337_v38 }
 0x1c1   :  { %494 = vtanh.f32 %v338_v39 }
 0x1c6   :  { %v339_v41 = vpop.f32.mrf.mxu2 }
 0x1c7   :  { %v495_v42 = vpop.eup %494 }
 0x1c8   :  { %v343_v43 = vmul.f32 %v495_v42, %v342_v40 }
 0x1ca   :  { %344 = vst [vmem:[#allocation11] sm:$0xff] %v343_v43 }
 0x1cb   :  { %355 = dma.vmem_to_hbm [thread:$0]  %s351_s9, 128, %s353_s11, [#allocation5]  }
 0x1cc   :  { %622 = dma.done.wait [#allocation5], 128  }
 0x1cd   :  { %623 = vsyncadd [#allocation5], 4294967168 }
 0x1ce   :  { %360 = vsyncpa [#allocation4], 1 }
 0x1cf   :  { %361 = vsyncpa [#allocation7], 1 }
 0x1d0   :  { %362 = vsyncpa [#allocation10], 1 }
 0x1d1   :  { %363 = vsyncpa [#allocation5], 1 }

</bundles_post_ra>
